<compile_context>
chip_gen: v7x
topology: tpu7x:2x2x1
jax: 0.10.0
libtpu: 0.0.40
codegen_flags: <defaults>
</compile_context>

<pallas_src>
import math
import functools

import jax
import jax.numpy as jnp
from jax.experimental import pallas as pl
from jax.experimental.pallas import tpu as pltpu


def _round_up(x, m):
    return ((x + m - 1) // m) * m


def _pick_tile_m(np_):
    # Prefer >= 2 row blocks so the "parallel" axis can split across the two
    # TensorCores on v7x; cap at 512 to bound VMEM on 64 MiB parts.
    for c in (512, 256, 128):
        if np_ % c == 0 and np_ // c >= 2:
            return c
    return 128


def _pick_tile_k(np_):
    # Large contraction tiles -> 2-4 KiB contiguous DMA runs per adjacency row.
    for c in (2048, 1024, 512, 256, 128):
        if np_ % c == 0:
            return c
    return 128


def _linear_layernorm_store(emb_i, acc_ref, wt_ref, gbb_ref, out_ref,
                            d_true, eps):
    """Epilogue: fused linear (two dots) + masked LayerNorm + store."""
    dp = acc_ref.shape[-1]
    gbb = gbb_ref[...]                                  # (3, Dp): bias/gamma/beta
    agg = acc_ref[...].astype(jnp.bfloat16)             # (TM, Dp)
    # Two dots against static weight slices (no (TM, 2*Dp) concat copy).
    h = (jnp.dot(emb_i, wt_ref[:dp, :], preferred_element_type=jnp.float32)
         + jnp.dot(agg, wt_ref[dp:, :], preferred_element_type=jnp.float32)
         + gbb[0:1, :])                                 # f32

    # LayerNorm over the true D columns (eps=1e-5, biased variance, torch-style).
    # Padded lanes of h are exactly zero (zero-padded weight cols / bias), so
    # the mean sum needs no mask.
    inv_d = 1.0 / float(d_true)
    mean = jnp.sum(h, axis=-1, keepdims=True) * inv_d
    diff = h - mean
    if dp != d_true:
        mask = (jax.lax.broadcasted_iota(jnp.int32, (1, dp), 1)
                < d_true).astype(jnp.float32)
        diff = diff * mask
    var = jnp.sum(diff * diff, axis=-1, keepdims=True) * inv_d
    normed = diff * jax.lax.rsqrt(var + eps)
    # gamma/beta are zero-padded beyond D, so padded lanes write exact 0.
    out_ref[...] = normed * gbb[1:2, :] + gbb[2:3, :]


def gcn_kernel_resident(adj_ref, emb_ref, wt_ref, gbb_ref, out_ref, acc_ref,
                        *, d_true, eps, tm, tk):
    """emb_ref holds the full (Np, Dp) embedding resident in VMEM."""
    i = pl.program_id(0)
    k = pl.program_id(1)

    @pl.when(k == 0)
    def _():
        acc_ref[...] = jnp.zeros_like(acc_ref)

    # int8 adjacency in HBM; cast on the VPU right before the MXU dot
    # (int8 -> f32 -> bf16: both steps are well-supported lowerings).
    adj_bf = adj_ref[...].astype(jnp.float32).astype(jnp.bfloat16)
    koff = pl.multiple_of(k * tk, tk)
    acc_ref[...] += jnp.dot(adj_bf, emb_ref[pl.ds(koff, tk), :],
                            preferred_element_type=jnp.float32)

    @pl.when(k == pl.num_programs(1) - 1)
    def _():
        ioff = pl.multiple_of(i * tm, tm)
        emb_i = emb_ref[pl.ds(ioff, tm), :]
        _linear_layernorm_store(emb_i, acc_ref, wt_ref, gbb_ref, out_ref,
                                d_true, eps)


def gcn_kernel_streamed(adj_ref, embk_ref, embi_ref, wt_ref, gbb_ref, out_ref,
                        acc_ref, *, d_true, eps):
    """Fallback when the embedding does not fit in VMEM: emb is streamed."""
    k = pl.program_id(1)

    @pl.when(k == 0)
    def _():
        acc_ref[...] = jnp.zeros_like(acc_ref)

    adj_bf = adj_ref[...].astype(jnp.float32).astype(jnp.bfloat16)
    acc_ref[...] += jnp.dot(adj_bf, embk_ref[...],
                            preferred_element_type=jnp.float32)

    @pl.when(k == pl.num_programs(1) - 1)
    def _():
        _linear_layernorm_store(embi_ref[...], acc_ref, wt_ref, gbb_ref,
                                out_ref, d_true, eps)


def gcn_layer_forward(emb, edges, w, b, gamma, beta, *, eps=1e-5):
    """emb: (N, D) f32; edges: (2, E) int32 COO; w: (D, 2D); b/gamma/beta: (D,)."""
    N, D = emb.shape
    Dp = _round_up(D, 128)          # lane-dense feature dim (do NOT pad to 256)
    Np = _round_up(N, 128)          # padded node count (rows & contraction)
    TM = _pick_tile_m(Np)           # output row tile
    TK = _pick_tile_k(Np)           # adjacency contraction tile

    # Glue: densify sparse COO adjacency into the padded int8 buffer
    # (duplicate edges sum, matching torch coalesce+matmul; exact for
    # multiplicities <= 127).
    # TODO(synk): cache this densification when `edges` is static, and for
    # large truly-sparse graphs replace it with a CSR + PrefetchScalarGridSpec
    # gather kernel (O(E*D) instead of O(N^2*D) traffic).
    adj = (jnp.zeros((Np, Np), jnp.int32)
           .at[edges[0], edges[1]].add(1)
           .astype(jnp.int8))

    emb_p = jnp.zeros((Np, Dp), jnp.bfloat16).at[:N, :D].set(
        emb.astype(jnp.bfloat16))

    # Fused, padded weight so [emb_p | agg_p] @ wt == concat([emb, agg]) @ W^T.
    wt = jnp.zeros((2 * Dp, Dp), jnp.bfloat16)
    wt = wt.at[:D, :D].set(jnp.transpose(w[:, :D]).astype(jnp.bfloat16))
    wt = wt.at[Dp:Dp + D, :D].set(jnp.transpose(w[:, D:]).astype(jnp.bfloat16))

    # bias / gamma / beta stacked into one resident (3, Dp) input.
    gbb = jnp.zeros((3, Dp), jnp.float32)
    gbb = gbb.at[0, :D].set(b).at[1, :D].set(gamma).at[2, :D].set(beta)

    grid = (Np // TM, Np // TK)

    # Keep the whole bf16 embedding resident in VMEM when small: removes the
    # per-row-block re-stream of emb (Np^2*Dp*2/TM bytes) entirely.
    resident = (2 * Np * Dp * 2) <= (8 << 20)   # double-buffered allocation

    flops = 2 * Np * Np * Dp + 2 * Np * (2 * Dp) * Dp
    emb_bytes = Np * Dp * 2 * (1 if resident else grid[0] + 1)
    bytes_accessed = (Np * Np                   # int8 adjacency
                      + emb_bytes
                      + 2 * (2 * Dp) * Dp       # weight
                      + 4 * Np * Dp             # output
                      + 3 * 4 * Dp)             # bias/gamma/beta

    # Per-step VMEM estimate (double-buffered I/O + accumulator scratch).
    vmem_est = (2 * TM * TK                     # adj int8
                + 2 * 2 * (2 * Dp) * Dp         # weight bf16
                + 2 * 4 * 8 * Dp                # gbb f32 (sublane-padded)
                + 2 * 4 * TM * Dp               # output f32
                + 4 * TM * Dp)                  # accumulator f32
    vmem_est += (2 * 2 * Np * Dp) if resident else (2 * 2 * (TM + TK) * Dp)
    # Only raise the scoped-VMEM cap when the v5e 16 MiB default is tight;
    # stay well under v7x's 64 MiB physical.
    vmem_limit = None if vmem_est <= (12 << 20) else min(vmem_est + (8 << 20),
                                                         48 << 20)

    if resident:
        kernel = functools.partial(gcn_kernel_resident, d_true=D, eps=eps,
                                   tm=TM, tk=TK)
        in_specs = [
            pl.BlockSpec((TM, TK), lambda i, k: (i, k)),       # adj tile (int8)
            pl.BlockSpec((Np, Dp), lambda i, k: (0, 0)),       # emb (resident)
            pl.BlockSpec((2 * Dp, Dp), lambda i, k: (0, 0)),   # fused weight
            pl.BlockSpec((3, Dp), lambda i, k: (0, 0)),        # bias/gamma/beta
        ]
        args = (adj, emb_p, wt, gbb)
    else:
        kernel = functools.partial(gcn_kernel_streamed, d_true=D, eps=eps)
        in_specs = [
            pl.BlockSpec((TM, TK), lambda i, k: (i, k)),       # adj tile (int8)
            pl.BlockSpec((TK, Dp), lambda i, k: (k, 0)),       # emb (contraction)
            pl.BlockSpec((TM, Dp), lambda i, k: (i, 0)),       # emb (self term)
            pl.BlockSpec((2 * Dp, Dp), lambda i, k: (0, 0)),   # fused weight
            pl.BlockSpec((3, Dp), lambda i, k: (0, 0)),        # bias/gamma/beta
        ]
        args = (adj, emb_p, emb_p, wt, gbb)

    out_p = pl.pallas_call(
        kernel,
        out_shape=jax.ShapeDtypeStruct((Np, Dp), jnp.float32),
        grid_spec=pltpu.PrefetchScalarGridSpec(
            num_scalar_prefetch=0,
            grid=grid,
            in_specs=in_specs,
            out_specs=pl.BlockSpec((TM, Dp), lambda i, k: (i, 0)),
            scratch_shapes=[pltpu.VMEM((TM, Dp), jnp.float32)],  # agg accumulator
        ),
        compiler_params=pltpu.CompilerParams(
            dimension_semantics=("parallel", "arbitrary"),
            vmem_limit_bytes=vmem_limit),
        cost_estimate=pl.CostEstimate(flops=flops, transcendentals=Np,
                                      bytes_accessed=bytes_accessed),
    )(*args)

    return out_p[:N, :D]


if __name__ == "__main__":
    key = jax.random.PRNGKey(0)
    k_emb, k_edge, k_w = jax.random.split(key, 3)

    # Small shapes consistent with the module: entity_size x embed_dim, edges = 2 x E.
    N = 16          # entity_size
    D = 32          # embed_dim
    E = 48          # edge count

    emb = jax.random.normal(k_emb, (N, D), dtype=jnp.float32)
    edges = jax.random.randint(k_edge, (2, E), 0, N, dtype=jnp.int32)

    # Deterministic parameter init matching reset_parameters():
    #   w.weight ~ U(-1/sqrt(D), 1/sqrt(D)), shape (D, 2D); w.bias = 0
    #   LayerNorm: gamma = 1, beta = 0
    std = 1.0 / math.sqrt(D)
    w = jax.random.uniform(k_w, (D, 2 * D), minval=-std, maxval=std,
                           dtype=jnp.float32)
    b = jnp.zeros((D,), jnp.float32)
    gamma = jnp.ones((D,), jnp.float32)
    beta = jnp.zeros((D,), jnp.float32)

    out = gcn_layer_forward(emb, edges, w, b, gamma, beta)
    out = jax.block_until_ready(out)

    # Pure-JAX references (outside Pallas).
    adj_ref = jnp.zeros((N, N), jnp.float32).at[edges[0], edges[1]].add(1.0)

    def layer_norm(h):
        mu = h.mean(-1, keepdims=True)
        va = ((h - mu) ** 2).mean(-1, keepdims=True)
        return (h - mu) / jnp.sqrt(va + 1e-5) * gamma + beta

    # Exact-math f32 reference (module semantics).
    agg_f32 = adj_ref @ emb
    ref_f32 = layer_norm(jnp.concatenate([emb, agg_f32], -1) @ w.T + b)

    # bf16-consistent reference (bf16 MXU inputs, f32 accumulation — same math
    # the kernel performs; int8 adjacency values are exact small integers).
    q = lambda x: x.astype(jnp.bfloat16).astype(jnp.float32)
    agg_bf = q(adj_ref) @ q(emb)
    h_bf = jnp.concatenate([q(emb), q(agg_bf)], -1) @ q(w).T + b
    ref_bf = layer_norm(h_bf)

    assert jnp.allclose(out, ref_bf, atol=2e-3, rtol=2e-3), \
        "mismatch vs bf16-consistent reference"
    assert jnp.allclose(out, ref_f32, atol=3e-2, rtol=3e-2), \
        "mismatch vs f32 reference"

    print("KERNEL_OK")
</pallas_src>

<mosaic_0001>
module attributes {stable_mosaic.version = 11 : i64} {
  func.func @gcn_kernel_resident(%arg0: i32, %arg1: i32, %arg2: memref<128x128xi8, #tpu.memory_space<vmem>>, %arg3: memref<128x128xbf16, #tpu.memory_space<vmem>>, %arg4: memref<256x128xbf16, #tpu.memory_space<vmem>>, %arg5: memref<3x128xf32, #tpu.memory_space<vmem>>, %arg6: memref<128x128xf32, #tpu.memory_space<vmem>>, %arg7: memref<128x128xf32, #tpu.memory_space<vmem>>) attributes {dimension_semantics = [#tpu.dimension_semantics<parallel>, #tpu.dimension_semantics<arbitrary>], iteration_bounds = array<i64: 1, 1>, scalar_prefetch = 0 : i64, scratch_operands = 1 : i64, tpu.core_type = #tpu.core_type<tc>, window_params = [{transform_indices = @transform_0, window_bounds = array<i64: 128, 128>}, {pipeline_mode = #tpu.pipeline_mode<synchronous>, transform_indices = @transform_1, window_bounds = array<i64: 128, 128>}, {pipeline_mode = #tpu.pipeline_mode<synchronous>, transform_indices = @transform_2, window_bounds = array<i64: 256, 128>}, {pipeline_mode = #tpu.pipeline_mode<synchronous>, transform_indices = @transform_3, window_bounds = array<i64: 3, 128>}, {transform_indices = @transform_4, window_bounds = array<i64: 128, 128>}]} {
    %c0_i32 = arith.constant 0 : i32
    %0 = arith.cmpi eq, %arg1, %c0_i32 : i32
    %1 = arith.extui %0 : i1 to i32
    %c0_i32_0 = arith.constant 0 : i32
    %2 = arith.cmpi ne, %1, %c0_i32_0 : i32
    scf.if %2 {
      %cst_9 = arith.constant 0.000000e+00 : f32
      %17 = vector.broadcast %cst_9 : f32 to vector<128x128xf32>
      %c0_10 = arith.constant 0 : index
      %c0_11 = arith.constant 0 : index
      %18 = vector.load %arg7[%c0_10, %c0_11] : memref<128x128xf32, #tpu.memory_space<vmem>>, vector<128x128xf32>
      tpu.vector_store %arg7[%c0_10, %c0_11], %17 {strides = array<i32>} : memref<128x128xf32, #tpu.memory_space<vmem>>, vector<128x128xf32>,
    } else {
    }
    %c0 = arith.constant 0 : index
    %c0_1 = arith.constant 0 : index
    %3 = vector.load %arg2[%c0, %c0_1] : memref<128x128xi8, #tpu.memory_space<vmem>>, vector<128x128xi8>
    %4 = arith.sitofp %3 : vector<128x128xi8> to vector<128x128xf32>
    %5 = arith.truncf %4 : vector<128x128xf32> to vector<128x128xbf16>
    %c128_i32 = arith.constant 128 : i32
    %6 = arith.muli %arg1, %c128_i32 : i32
    %7 = tpu.assume_multiple %6, 128 : i32
    %c0_2 = arith.constant 0 : index
    %c0_3 = arith.constant 0 : index
    %8 = vector.load %arg7[%c0_2, %c0_3] : memref<128x128xf32, #tpu.memory_space<vmem>>, vector<128x128xf32>
    %9 = arith.index_cast %7 : i32 to index
    %c0_4 = arith.constant 0 : index
    %10 = vector.load %arg3[%9, %c0_4] : memref<128x128xbf16, #tpu.memory_space<vmem>>, vector<128x128xbf16>
    %cst = arith.constant dense<0.000000e+00> : vector<128x128xf32>
    %11 = tpu.matmul %5, %10, %cst {dimension_numbers = #tpu.dot_dimension_numbers<[1], [0], [0], [1], [0, 0, 1, 1], [], []>} : vector<128x128xbf16>, vector<128x128xbf16>, vector<128x128xf32> -> vector<128x128xf32>
    %12 = arith.addf %8, %11 : vector<128x128xf32>
    %c0_5 = arith.constant 0 : index
    %c0_6 = arith.constant 0 : index
    %13 = vector.load %arg7[%c0_5, %c0_6] : memref<128x128xf32, #tpu.memory_space<vmem>>, vector<128x128xf32>
    tpu.vector_store %arg7[%c0_5, %c0_6], %12 {strides = array<i32>} : memref<128x128xf32, #tpu.memory_space<vmem>>, vector<128x128xf32>,
    %c0_i32_7 = arith.constant 0 : i32
    %14 = arith.cmpi eq, %arg1, %c0_i32_7 : i32
    %15 = arith.extui %14 : i1 to i32
    %c0_i32_8 = arith.constant 0 : i32
    %16 = arith.cmpi ne, %15, %c0_i32_8 : i32
    scf.if %16 {
      %c128_i32_9 = arith.constant 128 : i32
      %17 = arith.muli %arg0, %c128_i32_9 : i32
      %18 = tpu.assume_multiple %17, 128 : i32
      %19 = arith.index_cast %18 : i32 to index
      %c0_10 = arith.constant 0 : index
      %20 = vector.load %arg3[%19, %c0_10] : memref<128x128xbf16, #tpu.memory_space<vmem>>, vector<128x128xbf16>
      %c0_11 = arith.constant 0 : index
      %c0_12 = arith.constant 0 : index
      %21 = vector.load %arg5[%c0_11, %c0_12] : memref<3x128xf32, #tpu.memory_space<vmem>>, vector<3x128xf32>
      %c0_13 = arith.constant 0 : index
      %c0_14 = arith.constant 0 : index
      %22 = vector.load %arg7[%c0_13, %c0_14] : memref<128x128xf32, #tpu.memory_space<vmem>>, vector<128x128xf32>
      %23 = arith.truncf %22 : vector<128x128xf32> to vector<128x128xbf16>
      %c0_15 = arith.constant 0 : index
      %c0_16 = arith.constant 0 : index
      %24 = vector.load %arg4[%c0_15, %c0_16] : memref<256x128xbf16, #tpu.memory_space<vmem>>, vector<128x128xbf16>
      %cst_17 = arith.constant dense<0.000000e+00> : vector<128x128xf32>
      %25 = tpu.matmul %20, %24, %cst_17 {dimension_numbers = #tpu.dot_dimension_numbers<[1], [0], [0], [1], [0, 0, 1, 1], [], []>} : vector<128x128xbf16>, vector<128x128xbf16>, vector<128x128xf32> -> vector<128x128xf32>
      %c128 = arith.constant 128 : index
      %c0_18 = arith.constant 0 : index
      %26 = vector.load %arg4[%c128, %c0_18] : memref<256x128xbf16, #tpu.memory_space<vmem>>, vector<128x128xbf16>
      %cst_19 = arith.constant dense<0.000000e+00> : vector<128x128xf32>
      %27 = tpu.matmul %23, %26, %cst_19 {dimension_numbers = #tpu.dot_dimension_numbers<[1], [0], [0], [1], [0, 0, 1, 1], [], []>} : vector<128x128xbf16>, vector<128x128xbf16>, vector<128x128xf32> -> vector<128x128xf32>
      %28 = arith.addf %25, %27 : vector<128x128xf32>
      %29 = vector.extract_strided_slice %21 {offsets = [0, 0], sizes = [1, 128], strides = [1, 1]} : vector<3x128xf32> to vector<1x128xf32>
      %30 = vector.broadcast %29 : vector<1x128xf32> to vector<128x128xf32>
      %31 = arith.addf %28, %30 : vector<128x128xf32>
      %cst_20 = arith.constant dense<0.000000e+00> : vector<128xf32>
      %32 = vector.multi_reduction <add>, %31, %cst_20 [1] : vector<128x128xf32> to vector<128xf32>
      %33 = vector.shape_cast %32 : vector<128xf32> to vector<128x1xf32>
      %cst_21 = arith.constant 3.125000e-02 : f32
      %34 = vector.broadcast %cst_21 : f32 to vector<128x1xf32>
      %35 = arith.mulf %33, %34 : vector<128x1xf32>
      %36 = vector.broadcast %35 : vector<128x1xf32> to vector<128x128xf32>
      %37 = arith.subf %31, %36 : vector<128x128xf32>
      %38 = tpu.iota {dimensions = array<i32: 1>} : vector<1x128xi32>
      %c32_i32 = arith.constant 32 : i32
      %39 = vector.broadcast %c32_i32 : i32 to vector<1x128xi32>
      %40 = arith.cmpi slt, %38, %39 : vector<1x128xi32>
      %41 = arith.extui %40 : vector<1x128xi1> to vector<1x128xi32>
      %42 = arith.sitofp %41 : vector<1x128xi32> to vector<1x128xf32>
      %43 = vector.broadcast %42 : vector<1x128xf32> to vector<128x128xf32>
      %44 = arith.mulf %37, %43 : vector<128x128xf32>
      %45 = arith.mulf %44, %44 : vector<128x128xf32>
      %cst_22 = arith.constant dense<0.000000e+00> : vector<128xf32>
      %46 = vector.multi_reduction <add>, %45, %cst_22 [1] : vector<128x128xf32> to vector<128xf32>
      %47 = vector.shape_cast %46 : vector<128xf32> to vector<128x1xf32>
      %cst_23 = arith.constant 3.125000e-02 : f32
      %48 = vector.broadcast %cst_23 : f32 to vector<128x1xf32>
      %49 = arith.mulf %47, %48 : vector<128x1xf32>
      %cst_24 = arith.constant 9.99999974E-6 : f32
      %50 = vector.broadcast %cst_24 : f32 to vector<128x1xf32>
      %51 = arith.addf %49, %50 : vector<128x1xf32>
      %52 = math.rsqrt %51 : vector<128x1xf32>
      %53 = vector.broadcast %52 : vector<128x1xf32> to vector<128x128xf32>
      %54 = arith.mulf %44, %53 : vector<128x128xf32>
      %55 = vector.extract_strided_slice %21 {offsets = [1, 0], sizes = [1, 128], strides = [1, 1]} : vector<3x128xf32> to vector<1x128xf32>
      %56 = vector.broadcast %55 : vector<1x128xf32> to vector<128x128xf32>
      %57 = arith.mulf %54, %56 : vector<128x128xf32>
      %58 = vector.extract_strided_slice %21 {offsets = [2, 0], sizes = [1, 128], strides = [1, 1]} : vector<3x128xf32> to vector<1x128xf32>
      %59 = vector.broadcast %58 : vector<1x128xf32> to vector<128x128xf32>
      %60 = arith.addf %57, %59 : vector<128x128xf32>
      %c0_25 = arith.constant 0 : index
      %c0_26 = arith.constant 0 : index
      %61 = vector.load %arg6[%c0_25, %c0_26] : memref<128x128xf32, #tpu.memory_space<vmem>>, vector<128x128xf32>
      tpu.vector_store %arg6[%c0_25, %c0_26], %60 {strides = array<i32>} : memref<128x128xf32, #tpu.memory_space<vmem>>, vector<128x128xf32>,
    } else {
    }
    return
  }
  func.func @transform_0(%arg0: i32, %arg1: i32) -> (i32, i32) {
    %c0_i32 = arith.constant 0 : i32
    return %arg0, %arg1 : i32, i32
  }
  func.func @transform_1(%arg0: i32, %arg1: i32) -> (i32, i32) {
    %c0_i32 = arith.constant 0 : i32
    %c0_i32_0 = arith.constant 0 : i32
    %c0_i32_1 = arith.constant 0 : i32
    return %c0_i32, %c0_i32_0 : i32, i32
  }
  func.func @transform_2(%arg0: i32, %arg1: i32) -> (i32, i32) {
    %c0_i32 = arith.constant 0 : i32
    %c0_i32_0 = arith.constant 0 : i32
    %c0_i32_1 = arith.constant 0 : i32
    return %c0_i32, %c0_i32_0 : i32, i32
  }
  func.func @transform_3(%arg0: i32, %arg1: i32) -> (i32, i32) {
    %c0_i32 = arith.constant 0 : i32
    %c0_i32_0 = arith.constant 0 : i32
    %c0_i32_1 = arith.constant 0 : i32
    return %c0_i32, %c0_i32_0 : i32, i32
  }
  func.func @transform_4(%arg0: i32, %arg1: i32) -> (i32, i32) {
    %c0_i32 = arith.constant 0 : i32
    %c0_i32_0 = arith.constant 0 : i32
    return %arg0, %c0_i32 : i32, i32
  }
}

</mosaic_0001>

<bundles_post_ra>
// kernel: tpu_custom_call.1
= control target key start
LH: loop header
LB: loop body
LE: loop exit
PB: predicated region body
PF: predicated region fallthrough
CT: control target
= control target key end

     0   :  { %9 = vsyncpa [#allocation4], 0  ;;  %s1723_s0 = inlined_call_operand.hbm [shape: s8[128,128], index: 0, kind: input, shape index: {}]   ;;  %s1724_s1 = inlined_call_operand.hbm [shape: bf16[128,128], index: 1, kind: input, shape index: {}]   ;;  %s1725_s2 = inlined_call_operand.hbm [shape: bf16[256,128], index: 2, kind: input, shape index: {}]   ;;  %s1726_s3 = inlined_call_operand.vmem [shape: f32[3,128], index: 3, kind: input, shape index: {}]   ;;  %s1727_s4 = inlined_call_operand.hbm [shape: f32[128,128], index: 4, kind: output, shape index: {}]  }
   0x1   :  { %10 = vsyncpa [#allocation7], 0 }
   0x2   :  { %11 = vsyncpa [#allocation5], 0  ;;  %s1396_s15 = smov [#allocation6]   ;;  %s1302_s19 = scalar_lea.hbm %s1724_s1, 1024 }
   0x3   :  { %s29_s16 = sshll.u32 %s1396_s15, 4  ;;  %p1303_p0 = scmp.ne.s32.totalorder %s1724_s1, %s1302_s19  ;;  %s30_s16 = int_to_ptr.vmem [resolvable:$true] %s29_s16 }
   0x4   :  { %p1306_p1 = scmp.lt.u32.totalorder %s1302_s19, %s1724_s1 }
   0x6   :  { %p1308_p2 = pnand %p1306_p1, %p1303_p0 }
   0x8   :  { %1311 = shalt.err (!%p1308_p2)
}
   0x9   :  { %s1312_s24 = scalar_lea.vmem %s30_s16, 1024  ;;  %p1317_p4 = scmp.lt.s32.totalorder %s30_s16, %s30_s16 }
   0xa   :  { %p1313_p3 = scmp.ne.s32.totalorder %s30_s16, %s1312_s24  ;;  %p1318_p5 = scmp.lt.s32.totalorder %s1312_s24, %s1312_s24 }
   0xc   :  { %p1319_p6 = por %p1318_p5, %p1317_p4 }
   0xe   :  { %p1320_p7 = pnand %p1319_p6, %p1313_p3 }
  0x10   :  { %1323 = shalt.err (!%p1320_p7)
}
  0x11   :  { %s1397_s25 = smov 64   ;;  %s1398_s26 = smov 4  }
  0x12   :  { %35 = dma.hbm_to_vmem [thread:$0]  %s1724_s1, 1024, %s30_s16, [#allocation7], %s1397_s25, %s1397_s25, %s1398_s26  }
  0x13   :  { %s1399_s29 = smov [#allocation3]   ;;  %s1324_s7 = scalar_lea.hbm %s1723_s0, 512 }
  0x14   :  { %s17_s30 = sshll.u32 %s1399_s29, 4  ;;  %p1325_p8 = scmp.ne.s32.totalorder %s1723_s0, %s1324_s7  ;;  %s18_s30 = int_to_ptr.vmem [resolvable:$true] %s17_s30 }
  0x15   :  { %p1328_p9 = scmp.lt.u32.totalorder %s1324_s7, %s1723_s0 }
  0x17   :  { %p1330_p10 = pnand %p1328_p9, %p1325_p8 }
  0x19   :  { %1333 = shalt.err (!%p1330_p10)
}
  0x1a   :  { %s1334_s12 = scalar_lea.vmem %s18_s30, 512  ;;  %p1339_p12 = scmp.lt.s32.totalorder %s18_s30, %s18_s30 }
  0x1b   :  { %p1335_p11 = scmp.ne.s32.totalorder %s18_s30, %s1334_s12  ;;  %p1340_p13 = scmp.lt.s32.totalorder %s1334_s12, %s1334_s12 }
  0x1d   :  { %p1341_p0 = por %p1340_p13, %p1339_p12 }
  0x1f   :  { %p1342_p1 = pnand %p1341_p0, %p1335_p11 }
  0x21   :  { %1345 = shalt.err (!%p1342_p1)
}
  0x22   :  { %s1400_s1 = smov 128   ;;  %s1401_s13 = smov 8  }
  0x23   :  { %23 = dma.hbm_to_vmem [thread:$0]  %s1723_s0, 512, %s18_s30, [#allocation4], %s1400_s1, %s1400_s1, %s1401_s13  }
  0x24   :  { %s1402_s16 = smov [#allocation8]   ;;  %s1346_s20 = scalar_lea.hbm %s1725_s2, 2048 }
  0x25   :  { %s41_s17 = sshll.u32 %s1402_s16, 4  ;;  %p1347_p2 = scmp.ne.s32.totalorder %s1725_s2, %s1346_s20  ;;  %s42_s17 = int_to_ptr.vmem [resolvable:$true] %s41_s17 }
  0x26   :  { %p1350_p3 = scmp.lt.u32.totalorder %s1346_s20, %s1725_s2 }
  0x28   :  { %p1352_p4 = pnand %p1350_p3, %p1347_p2 }
  0x2a   :  { %1355 = shalt.err (!%p1352_p4)
}
  0x2b   :  { %s1356_s27 = scalar_lea.vmem %s42_s17, 2048  ;;  %p1361_p6 = scmp.lt.s32.totalorder %s42_s17, %s42_s17 }
  0x2c   :  { %p1357_p5 = scmp.ne.s32.totalorder %s42_s17, %s1356_s27  ;;  %p1362_p7 = scmp.lt.s32.totalorder %s1356_s27, %s1356_s27 }
  0x2e   :  { %p1363_p8 = por %p1362_p7, %p1361_p6 }
  0x30   :  { %p1364_p9 = pnand %p1363_p8, %p1357_p5 }
  0x32   :  { %1367 = shalt.err (!%p1364_p9)
}
  0x33   :  { %47 = dma.hbm_to_vmem [thread:$0]  %s1725_s2, 2048, %s42_s17, [#allocation7], %s1397_s25, %s1397_s25, %s1398_s26  }
  0x34   :  { %1390 = dma.done.wait [#allocation4], 512  }
  0x35   :  { %1391 = vsyncadd [#allocation4], 4294966784 }
  0x36   :  { %1392 = dma.done.wait [#allocation7], 3072  }
  0x37   :  { %1393 = vsyncadd [#allocation7], 4294964224  ;;  %v1238_v0 = vld [vmem:[#allocation6] sm:$0xff]   ;;  %v1239_v1 = vld [vmem:[#allocation6 + $0x8] sm:$0xff]  }
  0x38   :  { %1101 = vmatprep.subr.bf16.mxu0 %v1238_v0  ;;  %v1240_v2 = vld [vmem:[#allocation6 + $0x10] sm:$0xff]   ;;  %v1241_v3 = vld [vmem:[#allocation6 + $0x18] sm:$0xff]   ;;  %v80_v4 = vld [vmem:[#allocation3] sm:$0xff] }
  0x39   :  { %1102 = vmatpush3.bf16.msra.mxu0 %v1238_v0  ;;  %v84_v5 = vunpack.c.l.s8.bf16 %v80_v4  ;;  %v1246_v6 = vld [vmem:[#allocation8 + $0x40] sm:$0xff]   ;;  %v1248_v8 = vld [vmem:[#allocation8 + $0x48] sm:$0xff]   ;;  %v1250_v9 = vld [vmem:[#allocation8 + $0x50] sm:$0xff]   ;;  %v85_v18 = vunpack.c.h.s8.bf16 %v80_v4  ;;  %v725_v4 = vlaneseq }
  0x3a   :  { %1103 = vmatprep.subr.bf16.mxu0 %v1239_v1  ;;  %v1242_v7 = vld [vmem:[#allocation6 + $0x20] sm:$0xff]   ;;  %1133 = vmatprep.subr.bf16.mxu1 %v1246_v6  ;;  %v1243_v10 = vld [vmem:[#allocation6 + $0x28] sm:$0xff]   ;;  %v1252_v11 = vld [vmem:[#allocation8 + $0x58] sm:$0xff]  }
  0x3b   :  { %1117 = vmatprep.mubr.bf16.mxu0 %v84_v5  ;;  %1134 = vmatpush3.bf16.msra.mxu1 %v1246_v6  ;;  %v1244_v12 = vld [vmem:[#allocation6 + $0x30] sm:$0xff]   ;;  %v1254_v13 = vld [vmem:[#allocation8 + $0x60] sm:$0xff]   ;;  %v1245_v14 = vld [vmem:[#allocation6 + $0x38] sm:$0xff]  }
  0x3c   :  { %1135 = vmatprep.subr.bf16.mxu1 %v1248_v8  ;;  %v1256_v15 = vld [vmem:[#allocation8 + $0x68] sm:$0xff]   ;;  %v1475_v17 = vld [vmem:[#allocation8] sm:$0xff]   ;;  %v1258_v19 = vld [vmem:[#allocation8 + $0x70] sm:$0xff]  }
  0x3d   :  { %1104 = vmatpush3.bf16.msra.mxu0 %v1239_v1  ;;  %v81_v16 = vld [vmem:[#allocation3 + $0x8] sm:$0xff]  ;;  %v82_v22 = vld [vmem:[#allocation3 + $0x10] sm:$0xff]  ;;  %v1483_v26 = vld [vmem:[#allocation8 + $0x18] sm:$0xff]  }
  0x3e   :  { %1105 = vmatprep.subr.bf16.mxu0 %v1240_v2  ;;  %v86_v20 = vunpack.c.l.s8.bf16 %v81_v16  ;;  %v1478_v21 = vld [vmem:[#allocation8 + $0x8] sm:$0xff]   ;;  %v1251_v23 = vld [vmem:[#allocation8 + $0x10] sm:$0xff]   ;;  %v87_v24 = vunpack.c.h.s8.bf16 %v81_v16  ;;  %v88_v25 = vunpack.c.l.s8.bf16 %v82_v22  ;;  %v83_v27 = vld [vmem:[#allocation3 + $0x18] sm:$0xff]  ;;  %v89_v29 = vunpack.c.h.s8.bf16 %v82_v22 }
  0x3f   :  { %1136 = vmatpush3.bf16.msra.mxu1 %v1248_v8  ;;  %v1255_v28 = vld [vmem:[#allocation8 + $0x20] sm:$0xff]   ;;  %v90_v30 = vunpack.c.l.s8.bf16 %v83_v27  ;;  %v1487_v31 = vld [vmem:[#allocation8 + $0x28] sm:$0xff]   ;;  %v1490_v32 = vld [vmem:[#allocation8 + $0x30] sm:$0xff]   ;;  %v91_v33 = vunpack.c.h.s8.bf16 %v83_v27  ;;  %v726_v8 = vshrl.u32 %v725_v4, 7 }
  0x40   :  { %1137 = vmatprep.subr.bf16.mxu1 %v1250_v9  ;;  %v1260_v34 = vld [vmem:[#allocation8 + $0x78] sm:$0xff]   ;;  %v1262_v36 = vld [vmem:[#allocation6] sm:$0xff]   ;;  %v1263_v37 = vld [vmem:[#allocation6 + $0x8] sm:$0xff]  }
  0x41   :  { %1106 = vmatpush3.bf16.msra.mxu0 %v1240_v2  ;;  %v1261_v35 = vld [vmem:[#allocation8 + $0x38] sm:$0xff]   ;;  %v1264_v38 = vld [vmem:[#allocation6 + $0x10] sm:$0xff]   ;;  %v1266_v0 = vld [vmem:[#allocation6 + $0x20] sm:$0xff]  }
  0x42   :  { %1107 = vmatprep.subr.bf16.mxu0 %v1241_v3  ;;  %v1265_v39 = vld [vmem:[#allocation6 + $0x18] sm:$0xff]   ;;  %v1267_v1 = vld [vmem:[#allocation6 + $0x28] sm:$0xff]   ;;  %v1268_v2 = vld [vmem:[#allocation6 + $0x30] sm:$0xff]  }
  0x43   :  { %1138 = vmatpush3.bf16.msra.mxu1 %v1250_v9 }
  0x44   :  { %1139 = vmatprep.subr.bf16.mxu1 %v1252_v11 }
  0x45   :  { %1108 = vmatpush3.bf16.msra.mxu0 %v1241_v3  ;;  %v1269_v3 = vld [vmem:[#allocation6 + $0x38] sm:$0xff]  }
  0x46   :  { %1109 = vmatprep.subr.bf16.mxu0 %v1242_v7 }
  0x47   :  { %1140 = vmatpush3.bf16.msra.mxu1 %v1252_v11  ;;  %v964_v11 = vsub.s32 2, %v726_v8 }
  0x48   :  { %1141 = vmatprep.subr.bf16.mxu1 %v1254_v13 }
  0x49   :  { %1110 = vmatpush3.bf16.msra.mxu0 %v1242_v7 }
  0x4a   :  { %1111 = vmatprep.subr.bf16.mxu0 %v1243_v10 }
  0x4b   :  { %1142 = vmatpush3.bf16.msra.mxu1 %v1254_v13 }
  0x4c   :  { %1143 = vmatprep.subr.bf16.mxu1 %v1256_v15 }
  0x4d   :  { %1112 = vmatpush3.bf16.msra.mxu0 %v1243_v10  ;;  %v944_v10 = vsub.s32 1, %v726_v8 }
  0x4e   :  { %1113 = vmatprep.subr.bf16.mxu0 %v1244_v12 }
  0x4f   :  { %1144 = vmatpush3.bf16.msra.mxu1 %v1256_v15 }
  0x50   :  { %1145 = vmatprep.subr.bf16.mxu1 %v1258_v19 }
  0x51   :  { %1114 = vmatpush3.bf16.msra.mxu0 %v1244_v12  ;;  %v330_v12 = vld [vmem:[%s1726_s3] sm:$0x7]  ;;  %s1404_s3 = smov [#allocation9]  }
  0x52   :  { %1115 = vmatprep.subr.bf16.mxu0 %v1245_v14  ;;  %v1509_v13 = vrot.slane %v330_v12, %v944_v10  ;;  %s1003_s26 = sshll.u32 %s1404_s3, 4  ;;  %s1004_s26 = int_to_ptr.vmem [resolvable:$true] %s1003_s26 }
  0x53   :  { %1146 = vmatpush3.bf16.msra.mxu1 %v1258_v19  ;;  %v727_v19 = vsub.s32 0, %v726_v8  ;;  %s1368_s29 = scalar_lea.vmem %s1004_s26, 2048  ;;  %p1373_p11 = scmp.lt.s32.totalorder %s1004_s26, %s1004_s26 }
  0x54   :  { %1147 = vmatprep.subr.bf16.mxu1 %v1260_v34  ;;  %p1369_p10 = scmp.ne.s32.totalorder %s1004_s26, %s1368_s29  ;;  %p1374_p12 = scmp.lt.s32.totalorder %s1368_s29, %s1368_s29 }
  0x55   :  { %1116 = vmatpush3.bf16.msra.mxu0 %v1245_v14  ;;  %v1511_v14 = vrot.slane %v330_v12, %v964_v11 }
  0x56   :  { %1165 = vmatprep.subr.bf16.mxu0 %v1475_v17  ;;  %p1375_p13 = por %p1374_p12, %p1373_p11 }
  0x57   :  { %1148 = vmatpush3.bf16.msra.mxu1 %v1260_v34 }
  0x58   :  { %1118 = vmatmul.mubr.bf16.vlgmr.msra.gmra.mrb[0].mxu0 %v85_v18  ;;  %1197 = vmatprep.subr.bf16.mxu1 %v1475_v17  ;;  %p1376_p0 = pnand %p1375_p13, %p1369_p10 }
  0x59   :  { %1121 = vmatprep.mubr.bf16.mxu0 %v86_v20  ;;  %1166 = vmatpush3.bf16.msra.mxu0 %v1475_v17  ;;  %v728_v20 = vrot.slane %v330_v12, %v727_v19 }
  0x5a   :  { %1167 = vmatprep.subr.bf16.mxu0 %v1478_v21 }
  0x5d   :  { %1168 = vmatpush3.bf16.msra.mxu0 %v1478_v21 }
  0x5e   :  { %1169 = vmatprep.subr.bf16.mxu0 %v1251_v23 }
  0x60   :  { %1122 = vmatmul.mubr.bf16.gmra.mrb[4].mxu0 %v87_v24 }
  0x61   :  { %1125 = vmatprep.mubr.bf16.mxu0 %v88_v25  ;;  %1170 = vmatpush3.bf16.msra.mxu0 %v1251_v23 }
  0x62   :  { %1171 = vmatprep.subr.bf16.mxu0 %v1483_v26 }
  0x65   :  { %1172 = vmatpush3.bf16.msra.mxu0 %v1483_v26 }
  0x66   :  { %1173 = vmatprep.subr.bf16.mxu0 %v1255_v28 }
  0x68   :  { %1126 = vmatmul.mubr.bf16.gmra.mrb[8].mxu0 %v89_v29 }
  0x69   :  { %1129 = vmatprep.mubr.bf16.mxu0 %v90_v30  ;;  %1174 = vmatpush3.bf16.msra.mxu0 %v1255_v28 }
  0x6a   :  { %1175 = vmatprep.subr.bf16.mxu0 %v1487_v31 }
  0x6d   :  { %1176 = vmatpush3.bf16.msra.mxu0 %v1487_v31 }
  0x6e   :  { %1177 = vmatprep.subr.bf16.mxu0 %v1490_v32 }
  0x70   :  { %1130 = vmatmul.mubr.bf16.gmra.mrb[12].mxu0 %v91_v33 }
  0x71   :  { %1178 = vmatpush3.bf16.msra.mxu0 %v1490_v32  ;;  %1181 = vmatprep.mubr.bf16.mxu0 %v1262_v36 }
  0x72   :  { %1179 = vmatprep.subr.bf16.mxu0 %v1261_v35 }
  0x75   :  { %1180 = vmatpush3.bf16.msra.mxu0 %v1261_v35 }
  0x78   :  { %1182 = vmatmul.mubr.bf16.vlgmr.msra.gmra.mrb[16].mxu0 %v1263_v37 }
  0x79   :  { %1185 = vmatprep.mubr.bf16.mxu0 %v1264_v38 }
  0x80   :  { %1186 = vmatmul.mubr.bf16.gmra.mrb[20].mxu0 %v1265_v39 }
 0x12b   :  { %v1119_v40 = vpop.f32.mrb[0].mxu0 }
 0x12c   :  { %v211_v41 = vpop.f32.mrb[1].mxu0 }
 0x12d   :  { %v1120_v42 = vpop.f32.mrb[2].mxu0 }
 0x12e   :  { %v348_v43 = vpack.c.bf16 %v1120_v42, %v1119_v40  ;;  %v214_v44 = vpop.f32.mrb[3].mxu0 }
 0x12f   :  { %v347_v45 = vpack.c.bf16 %v214_v44, %v211_v41 }
 0x131   :  { %1149 = vmatprep.mubr.bf16.mxu1 %v347_v45 }
 0x132   :  { %1150 = vmatmul.mubr.bf16.vlgmr.msra.gmra.mrb[0].mxu1 %v348_v43 }
 0x133   :  { %1205 = vmatpush3.bf16.msra.mxu1 %v1475_v17  ;;  %v1123_v46 = vpop.f32.mrb[4].mxu0 }
 0x134   :  { %v227_v47 = vpop.f32.mrb[5].mxu0  ;;  %1198 = vmatprep.subr.bf16.mxu1 %v1478_v21 }
 0x135   :  { %v1124_v48 = vpop.f32.mrb[6].mxu0 }
 0x136   :  { %v350_v49 = vpack.c.bf16 %v1124_v48, %v1123_v46  ;;  %v230_v50 = vpop.f32.mrb[7].mxu0 }
 0x137   :  { %v349_v51 = vpack.c.bf16 %v230_v50, %v227_v47  ;;  %1206 = vmatpush3.bf16.msra.mxu1 %v1478_v21 }
 0x138   :  { %1199 = vmatprep.subr.bf16.mxu1 %v1251_v23 }
 0x139   :  { %1153 = vmatprep.mubr.bf16.mxu1 %v349_v51 }
 0x13a   :  { %1154 = vmatmul.mubr.bf16.gmra.mrb[4].mxu1 %v350_v49 }
 0x13b   :  { %1207 = vmatpush3.bf16.msra.mxu1 %v1251_v23  ;;  %v1127_v52 = vpop.f32.mrb[8].mxu0 }
 0x13c   :  { %v243_v53 = vpop.f32.mrb[9].mxu0  ;;  %1200 = vmatprep.subr.bf16.mxu1 %v1483_v26 }
 0x13d   :  { %v1128_v54 = vpop.f32.mrb[10].mxu0 }
 0x13e   :  { %v352_v55 = vpack.c.bf16 %v1128_v54, %v1127_v52  ;;  %v246_v56 = vpop.f32.mrb[11].mxu0 }
 0x13f   :  { %v351_v57 = vpack.c.bf16 %v246_v56, %v243_v53  ;;  %1208 = vmatpush3.bf16.msra.mxu1 %v1483_v26 }
 0x140   :  { %1201 = vmatprep.subr.bf16.mxu1 %v1255_v28 }
 0x141   :  { %1157 = vmatprep.mubr.bf16.mxu1 %v351_v57 }
 0x142   :  { %1158 = vmatmul.mubr.bf16.gmra.mrb[8].mxu1 %v352_v55 }
 0x143   :  { %1209 = vmatpush3.bf16.msra.mxu1 %v1255_v28  ;;  %v1131_v58 = vpop.f32.mrb[12].mxu0 }
 0x144   :  { %v259_v59 = vpop.f32.mrb[13].mxu0  ;;  %1202 = vmatprep.subr.bf16.mxu1 %v1487_v31 }
 0x145   :  { %v1132_v60 = vpop.f32.mrb[14].mxu0 }
 0x146   :  { %v354_v61 = vpack.c.bf16 %v1132_v60, %v1131_v58  ;;  %v262_v62 = vpop.f32.mrb[15].mxu0 }
 0x147   :  { %v353_v63 = vpack.c.bf16 %v262_v62, %v259_v59  ;;  %1210 = vmatpush3.bf16.msra.mxu1 %v1487_v31 }
 0x148   :  { %1203 = vmatprep.subr.bf16.mxu1 %v1490_v32 }
 0x149   :  { %1161 = vmatprep.mubr.bf16.mxu1 %v353_v63 }
 0x14a   :  { %1162 = vmatmul.mubr.bf16.gmra.mrb[12].mxu1 %v354_v61  ;;  %v810_v61 = vand.u32 127, %v725_v4 }
 0x14b   :  { %1211 = vmatpush3.bf16.msra.mxu1 %v1490_v32  ;;  %1189 = vmatprep.mubr.bf16.mxu1 %v1266_v0  ;;  %v1183_v5 = vpop.f32.mrb[16].mxu0 }
 0x14c   :  { %1204 = vmatprep.subr.bf16.mxu1 %v1261_v35  ;;  %v662_v6 = vpop.f32.mrb[17].mxu0  ;;  %vm811_vm0 = vcmp.lt.s32.totalorder %v810_v61, 32 }
 0x14d   :  { %v1184_v7 = vpop.f32.mrb[18].mxu0 }
 0x14e   :  { %v665_v9 = vpop.f32.mrb[19].mxu0 }
 0x14f   :  { %1212 = vmatpush3.bf16.msra.mxu1 %v1261_v35 }
 0x152   :  { %1190 = vmatmul.mubr.bf16.vlgmr.msra.gmra.mrb[8].mxu1 %v1267_v1 }
 0x153   :  { %1193 = vmatprep.mubr.bf16.mxu1 %v1268_v2  ;;  %v1187_v15 = vpop.f32.mrb[20].mxu0  ;;  %v1403_v2 = vmov 0.0  }
 0x154   :  { %v678_v16 = vpop.f32.mrb[21].mxu0 }
 0x155   :  { %v1188_v17 = vpop.f32.mrb[22].mxu0 }
 0x156   :  { %v681_v18 = vpop.f32.mrb[23].mxu0 }
 0x15a   :  { %1194 = vmatmul.mubr.bf16.gmra.mrb[12].mxu1 %v1269_v3  ;;  %v1562_v3 = vsel %vm811_vm0, 1.0, %v1403_v2 }
 0x205   :  { %v1151_v21 = vpop.f32.mrb[0].mxu1 }
 0x206   :  { %v671_v22 = vadd.f32 %v1183_v5, %v1151_v21  ;;  %v469_v23 = vpop.f32.mrb[1].mxu1 }
 0x207   :  { %v663_v24 = vadd.f32 %v662_v6, %v469_v23  ;;  %v1152_v25 = vpop.f32.mrb[2].mxu1 }
 0x208   :  { %v674_v26 = vadd.f32 %v1184_v7, %v1152_v25  ;;  %v472_v27 = vpop.f32.mrb[3].mxu1  ;;  %v1513_v28 = vadd.f32 %v728_v20, %v671_v22 }
 0x209   :  { %v666_v29 = vadd.f32 %v665_v9, %v472_v27  ;;  %v1515_v30 = vadd.f32 %v728_v20, %v663_v24 }
 0x20a   :  { %749 = vadd.xlane.f32.xlu1 %v1513_v28  ;;  %v1519_v31 = vadd.f32 %v728_v20, %v674_v26 }
 0x20b   :  { %745 = vadd.xlane.f32.xlu0 %v1515_v30  ;;  %v1521_v33 = vadd.f32 %v728_v20, %v666_v29 }
 0x20d   :  { %v1155_v32 = vpop.f32.mrb[4].mxu1 }
 0x20e   :  { %v687_v34 = vadd.f32 %v1187_v15, %v1155_v32  ;;  %v485_v35 = vpop.f32.mrb[5].mxu1  ;;  %751 = vadd.xlane.f32.xlu1 %v1519_v31 }
 0x20f   :  { %v679_v36 = vadd.f32 %v678_v16, %v485_v35  ;;  %v1156_v37 = vpop.f32.mrb[6].mxu1  ;;  %747 = vadd.xlane.f32.xlu0 %v1521_v33 }
 0x210   :  { %v690_v38 = vadd.f32 %v1188_v17, %v1156_v37  ;;  %v488_v39 = vpop.f32.mrb[7].mxu1  ;;  %v1525_v40 = vadd.f32 %v728_v20, %v687_v34 }
 0x211   :  { %v682_v41 = vadd.f32 %v681_v18, %v488_v39  ;;  %v1531_v43 = vadd.f32 %v728_v20, %v679_v36 }
 0x212   :  { %v1527_v42 = vadd.f32 %v728_v20, %v690_v38 }
 0x213   :  { %757 = vadd.xlane.f32.xlu0 %v1525_v40  ;;  %v1533_v44 = vadd.f32 %v728_v20, %v682_v41 }
 0x214   :  { %759 = vadd.xlane.f32.xlu1 %v1527_v42 }
 0x217   :  { %753 = vadd.xlane.f32.xlu0 %v1531_v43 }
 0x218   :  { %755 = vadd.xlane.f32.xlu1 %v1533_v44 }
 0x225   :  { %v1191_v45 = vpop.f32.mrb[8].mxu1 }
 0x226   :  { %v1537_v46 = vadd.f32 %v1191_v45, %v728_v20  ;;  %v694_v47 = vpop.f32.mrb[9].mxu1 }
 0x227   :  { %v1192_v48 = vpop.f32.mrb[10].mxu1  ;;  %v1542_v51 = vadd.f32 %v728_v20, %v694_v47 }
 0x228   :  { %v1539_v49 = vadd.f32 %v1192_v48, %v728_v20  ;;  %765 = vadd.xlane.f32.xlu0 %v1537_v46  ;;  %v697_v50 = vpop.f32.mrb[11].mxu1 }
 0x229   :  { %v1545_v52 = vadd.f32 %v728_v20, %v697_v50 }
 0x22a   :  { %767 = vadd.xlane.f32.xlu1 %v1539_v49 }
 0x22c   :  { %761 = vadd.xlane.f32.xlu0 %v1542_v51 }
 0x22d   :  { %v1195_v53 = vpop.f32.mrb[12].mxu1 }
 0x22e   :  { %763 = vadd.xlane.f32.xlu1 %v1545_v52  ;;  %v710_v54 = vpop.f32.mrb[13].mxu1  ;;  %v1554_v59 = vadd.f32 %v1195_v53, %v728_v20 }
 0x22f   :  { %v1549_v55 = vadd.f32 %v728_v20, %v710_v54  ;;  %v1196_v56 = vpop.f32.mrb[14].mxu1 }
 0x230   :  { %v713_v57 = vpop.f32.mrb[15].mxu1  ;;  %v1557_v60 = vadd.f32 %v1196_v56, %v728_v20 }
 0x231   :  { %v1551_v58 = vadd.f32 %v728_v20, %v713_v57  ;;  %769 = vadd.xlane.f32.xlu0 %v1549_v55 }
 0x233   :  { %771 = vadd.xlane.f32.xlu1 %v1551_v58 }
 0x235   :  { %773 = vadd.xlane.f32.xlu0 %v1554_v59 }
 0x237   :  { %775 = vadd.xlane.f32.xlu1 %v1557_v60 }
 0x297   :  { %v750_v62 = vpop.xlane.xlu1 %749 }
 0x298   :  { %v779_v63 = vmul.f32 0.03125, %v750_v62  ;;  %v746_v0 = vpop.xlane.xlu0 %745 }
 0x299   :  { %v777_v1 = vmul.f32 0.03125, %v746_v0 }
 0x29a   :  { %v795_v5 = vsub.f32 %v1513_v28, %v779_v63 }
 0x29b   :  { %v793_v6 = vsub.f32 %v1515_v30, %v777_v1  ;;  %v752_v7 = vpop.xlane.xlu1 %751 }
 0x29c   :  { %v780_v8 = vmul.f32 0.03125, %v752_v7  ;;  %v748_v9 = vpop.xlane.xlu0 %747  ;;  %v1567_v10 = vmul.f32 %v1562_v3, %v795_v5 }
 0x29d   :  { %v778_v11 = vmul.f32 0.03125, %v748_v9  ;;  %v1573_v15 = vmul.f32 %v1562_v3, %v793_v6 }
 0x29e   :  { %v796_v4 = vsub.f32 %v1519_v31, %v780_v8  ;;  %v832_v12 = vmul.f32 %v1567_v10, %v1567_v10 }
 0x29f   :  { %v794_v16 = vsub.f32 %v1521_v33, %v778_v11  ;;  %v830_v22 = vmul.f32 %v1573_v15, %v1573_v15 }
 0x2a0   :  { %v758_v17 = vpop.xlane.xlu0 %757  ;;  %850 = vadd.xlane.f32.xlu0 %v832_v12  ;;  %v1577_v18 = vmul.f32 %v1562_v3, %v796_v4 }
 0x2a1   :  { %v783_v19 = vmul.f32 0.03125, %v758_v17  ;;  %v760_v20 = vpop.xlane.xlu1 %759  ;;  %v1584_v24 = vmul.f32 %v1562_v3, %v794_v16 }
 0x2a2   :  { %v784_v21 = vmul.f32 0.03125, %v760_v20  ;;  %v833_v23 = vmul.f32 %v1577_v18, %v1577_v18 }
 0x2a3   :  { %v799_v25 = vsub.f32 %v1525_v40, %v783_v19  ;;  %v831_v32 = vmul.f32 %v1584_v24, %v1584_v24 }
 0x2a4   :  { %v800_v26 = vsub.f32 %v1527_v42, %v784_v21  ;;  %v754_v27 = vpop.xlane.xlu0 %753  ;;  %846 = vadd.xlane.f32.xlu0 %v830_v22  ;;  %852 = vadd.xlane.f32.xlu1 %v833_v23 }
 0x2a5   :  { %v781_v28 = vmul.f32 0.03125, %v754_v27  ;;  %v756_v29 = vpop.xlane.xlu1 %755  ;;  %v1589_v30 = vmul.f32 %v1562_v3, %v799_v25 }
 0x2a6   :  { %v782_v31 = vmul.f32 0.03125, %v756_v29  ;;  %v1594_v33 = vmul.f32 %v1562_v3, %v800_v26 }
 0x2a7   :  { %v797_v34 = vsub.f32 %v1531_v43, %v781_v28  ;;  %v836_v35 = vmul.f32 %v1589_v30, %v1589_v30 }
 0x2a8   :  { %v798_v36 = vsub.f32 %v1533_v44, %v782_v31  ;;  %848 = vadd.xlane.f32.xlu1 %v831_v32  ;;  %v837_v38 = vmul.f32 %v1594_v33, %v1594_v33 }
 0x2a9   :  { %858 = vadd.xlane.f32.xlu0 %v836_v35  ;;  %v1601_v37 = vmul.f32 %v1562_v3, %v797_v34 }
 0x2aa   :  { %v1606_v39 = vmul.f32 %v1562_v3, %v798_v36 }
 0x2ab   :  { %v834_v40 = vmul.f32 %v1601_v37, %v1601_v37 }
 0x2ac   :  { %860 = vadd.xlane.f32.xlu1 %v837_v38  ;;  %v835_v41 = vmul.f32 %v1606_v39, %v1606_v39 }
 0x2ad   :  { %854 = vadd.xlane.f32.xlu0 %v834_v40 }
 0x2b0   :  { %856 = vadd.xlane.f32.xlu1 %v835_v41 }
 0x2b5   :  { %v766_v42 = vpop.xlane.xlu0 %765 }
 0x2b6   :  { %v787_v43 = vmul.f32 0.03125, %v766_v42 }
 0x2b7   :  { %v768_v44 = vpop.xlane.xlu1 %767 }
 0x2b8   :  { %v803_v45 = vsub.f32 %v1537_v46, %v787_v43  ;;  %v788_v47 = vmul.f32 0.03125, %v768_v44 }
 0x2b9   :  { %v762_v48 = vpop.xlane.xlu0 %761 }
 0x2ba   :  { %v804_v50 = vsub.f32 %v1539_v49, %v788_v47  ;;  %v785_v53 = vmul.f32 0.03125, %v762_v48  ;;  %v1615_v54 = vmul.f32 %v1562_v3, %v803_v45 }
 0x2bb   :  { %v764_v56 = vpop.xlane.xlu1 %763 }
 0x2bc   :  { %v801_v57 = vsub.f32 %v1542_v51, %v785_v53  ;;  %v786_v61 = vmul.f32 0.03125, %v764_v56  ;;  %v840_v62 = vmul.f32 %v1615_v54, %v1615_v54  ;;  %v1621_v63 = vmul.f32 %v1562_v3, %v804_v50 }
 0x2be   :  { %v802_v46 = vsub.f32 %v1545_v52, %v786_v61  ;;  %866 = vadd.xlane.f32.xlu0 %v840_v62  ;;  %v770_v0 = vpop.xlane.xlu0 %769  ;;  %v841_v49 = vmul.f32 %v1621_v63, %v1621_v63  ;;  %v1627_v1 = vmul.f32 %v1562_v3, %v801_v57 }
 0x2bf   :  { %v789_v2 = vmul.f32 0.03125, %v770_v0 }
 0x2c0   :  { %868 = vadd.xlane.f32.xlu1 %v841_v49  ;;  %v772_v51 = vpop.xlane.xlu1 %771  ;;  %v838_v5 = vmul.f32 %v1627_v1, %v1627_v1  ;;  %v1632_v6 = vmul.f32 %v1562_v3, %v802_v46 }
 0x2c1   :  { %v805_v7 = vsub.f32 %v1549_v55, %v789_v2  ;;  %v790_v52 = vmul.f32 0.03125, %v772_v51 }
 0x2c2   :  { %862 = vadd.xlane.f32.xlu0 %v838_v5  ;;  %v774_v8 = vpop.xlane.xlu0 %773  ;;  %v839_v9 = vmul.f32 %v1632_v6, %v1632_v6 }
 0x2c3   :  { %v806_v11 = vsub.f32 %v1551_v58, %v790_v52  ;;  %v791_v4 = vmul.f32 0.03125, %v774_v8  ;;  %v1639_v12 = vmul.f32 %v1562_v3, %v805_v7 }
 0x2c4   :  { %864 = vadd.xlane.f32.xlu1 %v839_v9  ;;  %v776_v16 = vpop.xlane.xlu1 %775 }
 0x2c5   :  { %v807_v17 = vsub.f32 %v1554_v59, %v791_v4  ;;  %v792_v19 = vmul.f32 0.03125, %v776_v16  ;;  %v842_v55 = vmul.f32 %v1639_v12, %v1639_v12  ;;  %v1645_v20 = vmul.f32 %v1562_v3, %v806_v11 }
 0x2c7   :  { %v808_v21 = vsub.f32 %v1557_v60, %v792_v19  ;;  %870 = vadd.xlane.f32.xlu0 %v842_v55  ;;  %v843_v58 = vmul.f32 %v1645_v20, %v1645_v20  ;;  %v1651_v22 = vmul.f32 %v1562_v3, %v807_v17 }
 0x2c9   :  { %872 = vadd.xlane.f32.xlu1 %v843_v58  ;;  %v844_v59 = vmul.f32 %v1651_v22, %v1651_v22  ;;  %v1656_v23 = vmul.f32 %v1562_v3, %v808_v21 }
 0x2cb   :  { %874 = vadd.xlane.f32.xlu0 %v844_v59  ;;  %v845_v25 = vmul.f32 %v1656_v23, %v1656_v23 }
 0x2cd   :  { %876 = vadd.xlane.f32.xlu1 %v845_v25 }
 0x32d   :  { %v851_v60 = vpop.xlane.xlu0 %850 }
 0x32e   :  { %v880_v26 = vmul.f32 0.03125, %v851_v60 }
 0x330   :  { %v896_v27 = vadd.f32 1e-05, %v880_v26 }
 0x331   :  { %v847_v28 = vpop.xlane.xlu0 %846  ;;  %v853_v29 = vpop.xlane.xlu1 %852 }
 0x332   :  { %1270 = vrsqrt.f32 %v896_v27  ;;  %v878_v31 = vmul.f32 0.03125, %v847_v28  ;;  %v881_v32 = vmul.f32 0.03125, %v853_v29 }
 0x334   :  { %v894_v34 = vadd.f32 1e-05, %v878_v31  ;;  %v897_v35 = vadd.f32 1e-05, %v881_v32 }
 0x335   :  { %v849_v36 = vpop.xlane.xlu1 %848 }
 0x336   :  { %1272 = vrsqrt.f32 %v894_v34  ;;  %v879_v38 = vmul.f32 0.03125, %v849_v36  ;;  %v859_v3 = vpop.xlane.xlu0 %858 }
 0x337   :  { %1274 = vrsqrt.f32 %v897_v35  ;;  %v884_v40 = vmul.f32 0.03125, %v859_v3 }
 0x338   :  { %v895_v41 = vadd.f32 1e-05, %v879_v38 }
 0x339   :  { %v900_v42 = vadd.f32 1e-05, %v884_v40  ;;  %v861_v43 = vpop.xlane.xlu1 %860 }
 0x33a   :  { %1276 = vrsqrt.f32 %v895_v41  ;;  %v885_v44 = vmul.f32 0.03125, %v861_v43  ;;  %v855_v45 = vpop.xlane.xlu0 %854 }
 0x33b   :  { %1278 = vrsqrt.f32 %v900_v42  ;;  %v882_v47 = vmul.f32 0.03125, %v855_v45 }
 0x33c   :  { %v1271_v48 = vpop.eup %1270  ;;  %v901_v50 = vadd.f32 1e-05, %v885_v44 }
 0x33d   :  { %v928_v53 = vmul.f32 %v1271_v48, %v1567_v10  ;;  %v898_v56 = vadd.f32 1e-05, %v882_v47  ;;  %v857_v57 = vpop.xlane.xlu1 %856 }
 0x33e   :  { %1280 = vrsqrt.f32 %v901_v50  ;;  %v883_v61 = vmul.f32 0.03125, %v857_v57 }
 0x33f   :  { %v948_v62 = vmul.f32 %v1509_v13, %v928_v53  ;;  %1282 = vrsqrt.f32 %v898_v56 }
 0x340   :  { %v1273_v46 = vpop.eup %1272  ;;  %v899_v0 = vadd.f32 1e-05, %v883_v61 }
 0x341   :  { %v1275_v49 = vpop.eup %1274  ;;  %v968_v2 = vadd.f32 %v1511_v14, %v948_v62  ;;  %v926_v51 = vmul.f32 %v1273_v46, %v1573_v15 }
 0x342   :  { %v929_v5 = vmul.f32 %v1275_v49, %v1577_v18  ;;  %1284 = vrsqrt.f32 %v899_v0 }
 0x343   :  { %984 = vst [vmem:[#allocation9 + $0x10] sm:$0xff] %v968_v2  ;;  %v946_v10 = vmul.f32 %v1509_v13, %v926_v51 }
 0x344   :  { %v1277_v7 = vpop.eup %1276  ;;  %v949_v52 = vmul.f32 %v1509_v13, %v929_v5 }
 0x345   :  { %v1279_v8 = vpop.eup %1278  ;;  %v966_v9 = vadd.f32 %v1511_v14, %v946_v10  ;;  %v927_v11 = vmul.f32 %v1277_v7, %v1584_v24 }
 0x346   :  { %v969_v4 = vadd.f32 %v1511_v14, %v949_v52  ;;  %v932_v16 = vmul.f32 %v1279_v8, %v1589_v30 }
 0x347   :  { %982 = vst [vmem:[#allocation9] sm:$0xff] %v966_v9  ;;  %v947_v15 = vmul.f32 %v1509_v13, %v927_v11 }
 0x348   :  { %v1281_v18 = vpop.eup %1280  ;;  %985 = vst [vmem:[#allocation9 + $0x18] sm:$0xff] %v969_v4  ;;  %v952_v17 = vmul.f32 %v1509_v13, %v932_v16 }
 0x349   :  { %v1283_v19 = vpop.eup %1282  ;;  %v967_v55 = vadd.f32 %v1511_v14, %v947_v15  ;;  %v933_v21 = vmul.f32 %v1281_v18, %v1594_v33 }
 0x34a   :  { %v972_v58 = vadd.f32 %v1511_v14, %v952_v17  ;;  %v930_v24 = vmul.f32 %v1283_v19, %v1601_v37 }
 0x34b   :  { %983 = vst [vmem:[#allocation9 + $0x8] sm:$0xff] %v967_v55  ;;  %v953_v59 = vmul.f32 %v1509_v13, %v933_v21  ;;  %v867_v30 = vpop.xlane.xlu0 %866 }
 0x34c   :  { %v1285_v25 = vpop.eup %1284  ;;  %988 = vst [vmem:[#allocation9 + $0x30] sm:$0xff] %v972_v58  ;;  %v950_v60 = vmul.f32 %v1509_v13, %v930_v24  ;;  %v888_v26 = vmul.f32 0.03125, %v867_v30 }
 0x34d   :  { %v973_v27 = vadd.f32 %v1511_v14, %v953_v59  ;;  %v931_v28 = vmul.f32 %v1285_v25, %v1606_v39  ;;  %v869_v29 = vpop.xlane.xlu1 %868 }
 0x34e   :  { %v970_v33 = vadd.f32 %v1511_v14, %v950_v60  ;;  %v904_v31 = vadd.f32 1e-05, %v888_v26  ;;  %v889_v32 = vmul.f32 0.03125, %v869_v29 }
 0x34f   :  { %989 = vst [vmem:[#allocation9 + $0x38] sm:$0xff] %v973_v27  ;;  %v951_v37 = vmul.f32 %v1509_v13, %v931_v28  ;;  %v863_v34 = vpop.xlane.xlu0 %862 }
 0x350   :  { %986 = vst [vmem:[#allocation9 + $0x20] sm:$0xff] %v970_v33  ;;  %1286 = vrsqrt.f32 %v904_v31  ;;  %v905_v35 = vadd.f32 1e-05, %v889_v32  ;;  %v886_v36 = vmul.f32 0.03125, %v863_v34 }
 0x351   :  { %v971_v38 = vadd.f32 %v1511_v14, %v951_v37  ;;  %v865_v3 = vpop.xlane.xlu1 %864 }
 0x352   :  { %1288 = vrsqrt.f32 %v905_v35  ;;  %v902_v40 = vadd.f32 1e-05, %v886_v36  ;;  %v887_v41 = vmul.f32 0.03125, %v865_v3 }
 0x353   :  { %987 = vst [vmem:[#allocation9 + $0x28] sm:$0xff] %v971_v38 }
 0x354   :  { %1290 = vrsqrt.f32 %v902_v40  ;;  %v903_v39 = vadd.f32 1e-05, %v887_v41  ;;  %v871_v42 = vpop.xlane.xlu0 %870 }
 0x355   :  { %v890_v43 = vmul.f32 0.03125, %v871_v42 }
 0x356   :  { %1292 = vrsqrt.f32 %v903_v39  ;;  %v873_v44 = vpop.xlane.xlu1 %872 }
 0x357   :  { %v906_v45 = vadd.f32 1e-05, %v890_v43  ;;  %v891_v47 = vmul.f32 0.03125, %v873_v44 }
 0x358   :  { %v875_v48 = vpop.xlane.xlu0 %874 }
 0x359   :  { %1294 = vrsqrt.f32 %v906_v45  ;;  %v907_v50 = vadd.f32 1e-05, %v891_v47  ;;  %v892_v53 = vmul.f32 0.03125, %v875_v48 }
 0x35a   :  { %v1287_v56 = vpop.eup %1286  ;;  %v877_v57 = vpop.xlane.xlu1 %876 }
 0x35b   :  { %v936_v61 = vmul.f32 %v1287_v56, %v1615_v54  ;;  %1296 = vrsqrt.f32 %v907_v50  ;;  %v908_v62 = vadd.f32 1e-05, %v892_v53  ;;  %v893_v46 = vmul.f32 0.03125, %v877_v57 }
 0x35c   :  { %v1289_v0 = vpop.eup %1288 }
 0x35d   :  { %v956_v49 = vmul.f32 %v1509_v13, %v936_v61  ;;  %v937_v2 = vmul.f32 %v1289_v0, %v1621_v63  ;;  %1298 = vrsqrt.f32 %v908_v62  ;;  %v909_v51 = vadd.f32 1e-05, %v893_v46 }
 0x35e   :  { %v1291_v5 = vpop.eup %1290 }
 0x35f   :  { %v976_v10 = vadd.f32 %v1511_v14, %v956_v49  ;;  %v957_v7 = vmul.f32 %v1509_v13, %v937_v2  ;;  %v934_v52 = vmul.f32 %v1291_v5, %v1627_v1  ;;  %1300 = vrsqrt.f32 %v909_v51 }
 0x360   :  { %v1293_v8 = vpop.eup %1292 }
 0x361   :  { %992 = vst [vmem:[#allocation9 + $0x50] sm:$0xff] %v976_v10  ;;  %v977_v54 = vadd.f32 %v1511_v14, %v957_v7  ;;  %v954_v9 = vmul.f32 %v1509_v13, %v934_v52  ;;  %v935_v11 = vmul.f32 %v1293_v8, %v1632_v6 }
 0x363   :  { %v1295_v4 = vpop.eup %1294  ;;  %993 = vst [vmem:[#allocation9 + $0x58] sm:$0xff] %v977_v54  ;;  %v974_v63 = vadd.f32 %v1511_v14, %v954_v9  ;;  %v955_v16 = vmul.f32 %v1509_v13, %v935_v11 }
 0x364   :  { %v938_v15 = vmul.f32 %v1295_v4, %v1639_v12 }
 0x365   :  { %v1297_v18 = vpop.eup %1296  ;;  %990 = vst [vmem:[#allocation9 + $0x40] sm:$0xff] %v974_v63  ;;  %v975_v1 = vadd.f32 %v1511_v14, %v955_v16 }
 0x366   :  { %v958_v17 = vmul.f32 %v1509_v13, %v938_v15  ;;  %v939_v19 = vmul.f32 %v1297_v18, %v1645_v20 }
 0x367   :  { %v1299_v55 = vpop.eup %1298  ;;  %991 = vst [vmem:[#allocation9 + $0x48] sm:$0xff] %v975_v1 }
 0x368   :  { %v978_v6 = vadd.f32 %v1511_v14, %v958_v17  ;;  %v959_v21 = vmul.f32 %v1509_v13, %v939_v19  ;;  %v940_v58 = vmul.f32 %v1299_v55, %v1651_v22 }
 0x369   :  { %v1301_v24 = vpop.eup %1300 }
 0x36a   :  { %994 = vst [vmem:[#allocation9 + $0x60] sm:$0xff] %v978_v6  ;;  %v979_v12 = vadd.f32 %v1511_v14, %v959_v21  ;;  %v960_v59 = vmul.f32 %v1509_v13, %v940_v58  ;;  %v941_v30 = vmul.f32 %v1301_v24, %v1656_v23 }
 0x36c   :  { %995 = vst [vmem:[#allocation9 + $0x68] sm:$0xff] %v979_v12  ;;  %v980_v20 = vadd.f32 %v1511_v14, %v960_v59  ;;  %v961_v25 = vmul.f32 %v1509_v13, %v941_v30 }
 0x36e   :  { %996 = vst [vmem:[#allocation9 + $0x70] sm:$0xff] %v980_v20  ;;  %v981_v60 = vadd.f32 %v1511_v14, %v961_v25 }
 0x370   :  { %997 = vst [vmem:[#allocation9 + $0x78] sm:$0xff] %v981_v60 }
 0x371   :  { %1379 = shalt.err (!%p1376_p0)
}
 0x372   :  { %s1380_s6 = scalar_lea.hbm %s1727_s4, 2048 }
 0x373   :  { %p1381_p1 = scmp.ne.s32.totalorder %s1727_s4, %s1380_s6  ;;  %p1384_p2 = scmp.lt.u32.totalorder %s1380_s6, %s1727_s4 }
 0x375   :  { %p1386_p3 = pnand %p1384_p2, %p1381_p1 }
 0x377   :  { %1389 = shalt.err (!%p1386_p3)
}
 0x378   :  { %1009 = dma.vmem_to_hbm [thread:$0]  %s1004_s26, 2048, %s1727_s4, [#allocation5], %s1400_s1, %s1400_s1, %s1401_s13  }
 0x379   :  { %1394 = dma.done.wait [#allocation5], 2048  }
 0x37a   :  { %1395 = vsyncadd [#allocation5], 4294965248 }
 0x37b   :  { %1013 = vsyncpa [#allocation4], 1 }
 0x37c   :  { %1014 = vsyncpa [#allocation7], 1 }
 0x37d   :  { %1015 = vsyncpa [#allocation5], 1 }

</bundles_post_ra>
